<compile_context>
chip_gen: v7x
topology: tpu7x:2x2x1
jax: 0.10.0
libtpu: 0.0.40
codegen_flags: <defaults>
</compile_context>

<pallas_src>
import functools

import jax
import jax.numpy as jnp
from jax.experimental import pallas as pl
from jax.experimental.pallas import tpu as pltpu


_MAX_T_TILE = 2048   # lanes per block (multiple of 128)
_MAX_B_TILE = 128    # sublanes per block (multiple of 8)


def _ccc_loss_kernel(y_pred_ref, y_true_ref, ccc_ref,
                     s_t, s_p, s_tt, s_pp, s_tp,
                     *, T, b_tile, t_tile):
    k = pl.program_id(1)
    nk = pl.num_programs(1)

    @pl.when(k == 0)
    def _init():
        for s in (s_t, s_p, s_tt, s_pp, s_tp):
            s[...] = jnp.zeros_like(s)

    yp = y_pred_ref[...].astype(jnp.float32)   # (b_tile, t_tile)
    yt = y_true_ref[...].astype(jnp.float32)

    # Mask out-of-range lanes of the last T tile (only traced when needed).
    if T % t_tile != 0:
        col = jax.lax.broadcasted_iota(jnp.int32, (b_tile, t_tile), 1) + k * t_tile
        valid = col < T
        yp = jnp.where(valid, yp, 0.0)
        yt = jnp.where(valid, yt, 0.0)

    # One-pass raw moments: sums only, no per-tile divides.
    s_t[...] += jnp.sum(yt, axis=1, keepdims=True)
    s_p[...] += jnp.sum(yp, axis=1, keepdims=True)
    s_tt[...] += jnp.sum(yt * yt, axis=1, keepdims=True)
    s_pp[...] += jnp.sum(yp * yp, axis=1, keepdims=True)
    s_tp[...] += jnp.sum(yt * yp, axis=1, keepdims=True)

    @pl.when(k == nk - 1)
    def _finalize():
        inv_n = 1.0 / T
        mt = s_t[...] * inv_n
        mp = s_p[...] * inv_n
        var_t = s_tt[...] * inv_n - mt * mt      # torch.var(unbiased=False)
        var_p = s_pp[...] * inv_n - mp * mp
        cov = s_tp[...] * inv_n - mt * mp
        md = mt - mp
        denom = var_t + var_p + md * md
        # EUP approximate reciprocal + one Newton step -> ~f32 accuracy,
        # no VPU divide (finalize runs once per B block).
        r = pl.reciprocal(denom, approx=True)
        r = r * (2.0 - denom * r)
        ccc_ref[...] = 2.0 * cov * r             # per-row ccc, (b_tile, 1)


def ccc_loss(y_pred, y_true, *, b_tile=None, t_tile=None):
    """CCC loss, equivalent to the PyTorch CCCLoss.forward. Inputs (B, T)."""
    assert y_pred.shape == y_true.shape and y_pred.ndim == 2
    B, T = y_pred.shape

    if b_tile is None:
        b_tile = B if B <= _MAX_B_TILE else _MAX_B_TILE
    if t_tile is None:
        t_tile = T if T <= _MAX_T_TILE else _MAX_T_TILE
    assert b_tile == B or b_tile % 8 == 0
    assert t_tile == T or t_tile % 128 == 0

    nb = pl.cdiv(B, b_tile)
    nt = pl.cdiv(T, t_tile)

    in_bytes = B * T * (jnp.dtype(y_pred.dtype).itemsize
                        + jnp.dtype(y_true.dtype).itemsize)
    kernel = functools.partial(_ccc_loss_kernel, T=T, b_tile=b_tile, t_tile=t_tile)

    # TODO(synk): scalar SMEM output (vector-reduce -> SMEM store) skipped for
    # lowering robustness; per-row ccc in VMEM + tiny wrapper mean instead.
    ccc_rows = pl.pallas_call(
        kernel,
        out_shape=jax.ShapeDtypeStruct((B, 1), jnp.float32),
        grid_spec=pltpu.PrefetchScalarGridSpec(
            num_scalar_prefetch=0,
            grid=(nb, nt),
            in_specs=[
                pl.BlockSpec((b_tile, t_tile), lambda b, k: (b, k)),
                pl.BlockSpec((b_tile, t_tile), lambda b, k: (b, k)),
            ],
            out_specs=pl.BlockSpec((b_tile, 1), lambda b, k: (b, 0)),
            scratch_shapes=[pltpu.VMEM((b_tile, 1), jnp.float32)
                            for _ in range(5)],
        ),
        compiler_params=pltpu.CompilerParams(
            dimension_semantics=("parallel", "arbitrary"),
            vmem_limit_bytes=32 * 1024 * 1024,
        ),
        cost_estimate=pl.CostEstimate(
            flops=10 * B * T,
            transcendentals=0,
            bytes_accessed=in_bytes + B * 4,
        ),
    )(y_pred, y_true)

    return (1.0 - jnp.mean(ccc_rows)).astype(jnp.float32)


def _ccc_loss_ref(y_pred, y_true):
    # Pure-JAX reference mirroring the PyTorch forward.
    yt = y_true.astype(jnp.float32)
    yp = y_pred.astype(jnp.float32)
    yt_mean = jnp.mean(yt, axis=1, keepdims=True)
    yp_mean = jnp.mean(yp, axis=1, keepdims=True)
    yt_var = jnp.mean((yt - yt_mean) ** 2, axis=1)
    yp_var = jnp.mean((yp - yp_mean) ** 2, axis=1)
    cov = jnp.mean((yt - yt_mean) * (yp - yp_mean), axis=1)
    ccc = 2 * cov / (yt_var + yp_var + jnp.squeeze(yt_mean - yp_mean, axis=1) ** 2)
    return 1.0 - jnp.mean(ccc)


if __name__ == "__main__":
    key = jax.random.PRNGKey(0)

    def make(B, T, dtype):
        k1, k2 = jax.random.split(jax.random.fold_in(key, B * 100003 + T))
        yp = jax.random.normal(k1, (B, T), dtype=jnp.float32)
        yt = 0.5 * yp + jax.random.normal(k2, (B, T), dtype=jnp.float32)
        return yp.astype(dtype), yt.astype(dtype)

    # 1) Single-block path (whole array in one tile), small shapes.
    yp, yt = make(8, 256, jnp.float32)
    got = jax.block_until_ready(ccc_loss(yp, yt))
    want = jax.block_until_ready(_ccc_loss_ref(yp, yt))
    assert jnp.allclose(got, want, rtol=1e-4, atol=1e-4), (float(got), float(want))

    # 2) Multi-tile B (ragged, clipped rows) + ragged T (lane-mask path).
    yp, yt = make(12, 300, jnp.float32)
    got = jax.block_until_ready(ccc_loss(yp, yt, b_tile=8, t_tile=128))
    want = jax.block_until_ready(_ccc_loss_ref(yp, yt))
    assert jnp.allclose(got, want, rtol=1e-4, atol=1e-4), (float(got), float(want))

    # 3) bf16 inputs streamed as-is, cast to f32 inside the kernel.
    yp, yt = make(8, 256, jnp.bfloat16)
    got = jax.block_until_ready(ccc_loss(yp, yt))
    want = jax.block_until_ready(_ccc_loss_ref(yp, yt))
    assert jnp.allclose(got, want, rtol=1e-3, atol=1e-3), (float(got), float(want))

    print("KERNEL_OK")
</pallas_src>

<mosaic_0001>
module attributes {stable_mosaic.version = 11 : i64} {
  func.func @_ccc_loss_kernel(%arg0: i32, %arg1: i32, %arg2: memref<8x256xf32, #tpu.memory_space<vmem>>, %arg3: memref<8x256xf32, #tpu.memory_space<vmem>>, %arg4: memref<8x1xf32, #tpu.memory_space<vmem>>, %arg5: memref<8x1xf32, #tpu.memory_space<vmem>>, %arg6: memref<8x1xf32, #tpu.memory_space<vmem>>, %arg7: memref<8x1xf32, #tpu.memory_space<vmem>>, %arg8: memref<8x1xf32, #tpu.memory_space<vmem>>, %arg9: memref<8x1xf32, #tpu.memory_space<vmem>>) attributes {dimension_semantics = [#tpu.dimension_semantics<parallel>, #tpu.dimension_semantics<arbitrary>], iteration_bounds = array<i64: 1, 1>, scalar_prefetch = 0 : i64, scratch_operands = 5 : i64, tpu.core_type = #tpu.core_type<tc>, window_params = [{transform_indices = @transform_0, window_bounds = array<i64: 8, 256>}, {transform_indices = @transform_1, window_bounds = array<i64: 8, 256>}, {transform_indices = @transform_2, window_bounds = array<i64: 8, 1>}]} {
    %c0_i32 = arith.constant 0 : i32
    %0 = arith.cmpi eq, %arg1, %c0_i32 : i32
    %1 = arith.extui %0 : i1 to i32
    %c0_i32_0 = arith.constant 0 : i32
    %2 = arith.cmpi ne, %1, %c0_i32_0 : i32
    scf.if %2 {
      %cst_30 = arith.constant 0.000000e+00 : f32
      %36 = vector.broadcast %cst_30 : f32 to vector<8x1xf32>
      %c0_31 = arith.constant 0 : index
      %c0_32 = arith.constant 0 : index
      %37 = vector.load %arg5[%c0_31, %c0_32] : memref<8x1xf32, #tpu.memory_space<vmem>>, vector<8x1xf32>
      tpu.vector_store %arg5[%c0_31, %c0_32], %36 {strides = array<i32>} : memref<8x1xf32, #tpu.memory_space<vmem>>, vector<8x1xf32>,
      %cst_33 = arith.constant 0.000000e+00 : f32
      %38 = vector.broadcast %cst_33 : f32 to vector<8x1xf32>
      %c0_34 = arith.constant 0 : index
      %c0_35 = arith.constant 0 : index
      %39 = vector.load %arg6[%c0_34, %c0_35] : memref<8x1xf32, #tpu.memory_space<vmem>>, vector<8x1xf32>
      tpu.vector_store %arg6[%c0_34, %c0_35], %38 {strides = array<i32>} : memref<8x1xf32, #tpu.memory_space<vmem>>, vector<8x1xf32>,
      %cst_36 = arith.constant 0.000000e+00 : f32
      %40 = vector.broadcast %cst_36 : f32 to vector<8x1xf32>
      %c0_37 = arith.constant 0 : index
      %c0_38 = arith.constant 0 : index
      %41 = vector.load %arg7[%c0_37, %c0_38] : memref<8x1xf32, #tpu.memory_space<vmem>>, vector<8x1xf32>
      tpu.vector_store %arg7[%c0_37, %c0_38], %40 {strides = array<i32>} : memref<8x1xf32, #tpu.memory_space<vmem>>, vector<8x1xf32>,
      %cst_39 = arith.constant 0.000000e+00 : f32
      %42 = vector.broadcast %cst_39 : f32 to vector<8x1xf32>
      %c0_40 = arith.constant 0 : index
      %c0_41 = arith.constant 0 : index
      %43 = vector.load %arg8[%c0_40, %c0_41] : memref<8x1xf32, #tpu.memory_space<vmem>>, vector<8x1xf32>
      tpu.vector_store %arg8[%c0_40, %c0_41], %42 {strides = array<i32>} : memref<8x1xf32, #tpu.memory_space<vmem>>, vector<8x1xf32>,
      %cst_42 = arith.constant 0.000000e+00 : f32
      %44 = vector.broadcast %cst_42 : f32 to vector<8x1xf32>
      %c0_43 = arith.constant 0 : index
      %c0_44 = arith.constant 0 : index
      %45 = vector.load %arg9[%c0_43, %c0_44] : memref<8x1xf32, #tpu.memory_space<vmem>>, vector<8x1xf32>
      tpu.vector_store %arg9[%c0_43, %c0_44], %44 {strides = array<i32>} : memref<8x1xf32, #tpu.memory_space<vmem>>, vector<8x1xf32>,
    } else {
    }
    %c0 = arith.constant 0 : index
    %c0_1 = arith.constant 0 : index
    %3 = vector.load %arg2[%c0, %c0_1] : memref<8x256xf32, #tpu.memory_space<vmem>>, vector<8x256xf32>
    %c0_2 = arith.constant 0 : index
    %c0_3 = arith.constant 0 : index
    %4 = vector.load %arg3[%c0_2, %c0_3] : memref<8x256xf32, #tpu.memory_space<vmem>>, vector<8x256xf32>
    %c0_4 = arith.constant 0 : index
    %c0_5 = arith.constant 0 : index
    %5 = vector.load %arg5[%c0_4, %c0_5] : memref<8x1xf32, #tpu.memory_space<vmem>>, vector<8x1xf32>
    %cst = arith.constant dense<0.000000e+00> : vector<8xf32>
    %6 = vector.multi_reduction <add>, %4, %cst [1] : vector<8x256xf32> to vector<8xf32>
    %7 = vector.shape_cast %6 : vector<8xf32> to vector<8x1xf32>
    %8 = arith.addf %5, %7 : vector<8x1xf32>
    %c0_6 = arith.constant 0 : index
    %c0_7 = arith.constant 0 : index
    %9 = vector.load %arg5[%c0_6, %c0_7] : memref<8x1xf32, #tpu.memory_space<vmem>>, vector<8x1xf32>
    tpu.vector_store %arg5[%c0_6, %c0_7], %8 {strides = array<i32>} : memref<8x1xf32, #tpu.memory_space<vmem>>, vector<8x1xf32>,
    %c0_8 = arith.constant 0 : index
    %c0_9 = arith.constant 0 : index
    %10 = vector.load %arg6[%c0_8, %c0_9] : memref<8x1xf32, #tpu.memory_space<vmem>>, vector<8x1xf32>
    %cst_10 = arith.constant dense<0.000000e+00> : vector<8xf32>
    %11 = vector.multi_reduction <add>, %3, %cst_10 [1] : vector<8x256xf32> to vector<8xf32>
    %12 = vector.shape_cast %11 : vector<8xf32> to vector<8x1xf32>
    %13 = arith.addf %10, %12 : vector<8x1xf32>
    %c0_11 = arith.constant 0 : index
    %c0_12 = arith.constant 0 : index
    %14 = vector.load %arg6[%c0_11, %c0_12] : memref<8x1xf32, #tpu.memory_space<vmem>>, vector<8x1xf32>
    tpu.vector_store %arg6[%c0_11, %c0_12], %13 {strides = array<i32>} : memref<8x1xf32, #tpu.memory_space<vmem>>, vector<8x1xf32>,
    %c0_13 = arith.constant 0 : index
    %c0_14 = arith.constant 0 : index
    %15 = vector.load %arg7[%c0_13, %c0_14] : memref<8x1xf32, #tpu.memory_space<vmem>>, vector<8x1xf32>
    %16 = arith.mulf %4, %4 : vector<8x256xf32>
    %cst_15 = arith.constant dense<0.000000e+00> : vector<8xf32>
    %17 = vector.multi_reduction <add>, %16, %cst_15 [1] : vector<8x256xf32> to vector<8xf32>
    %18 = vector.shape_cast %17 : vector<8xf32> to vector<8x1xf32>
    %19 = arith.addf %15, %18 : vector<8x1xf32>
    %c0_16 = arith.constant 0 : index
    %c0_17 = arith.constant 0 : index
    %20 = vector.load %arg7[%c0_16, %c0_17] : memref<8x1xf32, #tpu.memory_space<vmem>>, vector<8x1xf32>
    tpu.vector_store %arg7[%c0_16, %c0_17], %19 {strides = array<i32>} : memref<8x1xf32, #tpu.memory_space<vmem>>, vector<8x1xf32>,
    %c0_18 = arith.constant 0 : index
    %c0_19 = arith.constant 0 : index
    %21 = vector.load %arg8[%c0_18, %c0_19] : memref<8x1xf32, #tpu.memory_space<vmem>>, vector<8x1xf32>
    %22 = arith.mulf %3, %3 : vector<8x256xf32>
    %cst_20 = arith.constant dense<0.000000e+00> : vector<8xf32>
    %23 = vector.multi_reduction <add>, %22, %cst_20 [1] : vector<8x256xf32> to vector<8xf32>
    %24 = vector.shape_cast %23 : vector<8xf32> to vector<8x1xf32>
    %25 = arith.addf %21, %24 : vector<8x1xf32>
    %c0_21 = arith.constant 0 : index
    %c0_22 = arith.constant 0 : index
    %26 = vector.load %arg8[%c0_21, %c0_22] : memref<8x1xf32, #tpu.memory_space<vmem>>, vector<8x1xf32>
    tpu.vector_store %arg8[%c0_21, %c0_22], %25 {strides = array<i32>} : memref<8x1xf32, #tpu.memory_space<vmem>>, vector<8x1xf32>,
    %c0_23 = arith.constant 0 : index
    %c0_24 = arith.constant 0 : index
    %27 = vector.load %arg9[%c0_23, %c0_24] : memref<8x1xf32, #tpu.memory_space<vmem>>, vector<8x1xf32>
    %28 = arith.mulf %4, %3 : vector<8x256xf32>
    %cst_25 = arith.constant dense<0.000000e+00> : vector<8xf32>
    %29 = vector.multi_reduction <add>, %28, %cst_25 [1] : vector<8x256xf32> to vector<8xf32>
    %30 = vector.shape_cast %29 : vector<8xf32> to vector<8x1xf32>
    %31 = arith.addf %27, %30 : vector<8x1xf32>
    %c0_26 = arith.constant 0 : index
    %c0_27 = arith.constant 0 : index
    %32 = vector.load %arg9[%c0_26, %c0_27] : memref<8x1xf32, #tpu.memory_space<vmem>>, vector<8x1xf32>
    tpu.vector_store %arg9[%c0_26, %c0_27], %31 {strides = array<i32>} : memref<8x1xf32, #tpu.memory_space<vmem>>, vector<8x1xf32>,
    %c0_i32_28 = arith.constant 0 : i32
    %33 = arith.cmpi eq, %arg1, %c0_i32_28 : i32
    %34 = arith.extui %33 : i1 to i32
    %c0_i32_29 = arith.constant 0 : i32
    %35 = arith.cmpi ne, %34, %c0_i32_29 : i32
    scf.if %35 {
      %c0_30 = arith.constant 0 : index
      %c0_31 = arith.constant 0 : index
      %36 = vector.load %arg5[%c0_30, %c0_31] : memref<8x1xf32, #tpu.memory_space<vmem>>, vector<8x1xf32>
      %cst_32 = arith.constant 3.906250e-03 : f32
      %37 = vector.broadcast %cst_32 : f32 to vector<8x1xf32>
      %38 = arith.mulf %36, %37 : vector<8x1xf32>
      %c0_33 = arith.constant 0 : index
      %c0_34 = arith.constant 0 : index
      %39 = vector.load %arg6[%c0_33, %c0_34] : memref<8x1xf32, #tpu.memory_space<vmem>>, vector<8x1xf32>
      %cst_35 = arith.constant 3.906250e-03 : f32
      %40 = vector.broadcast %cst_35 : f32 to vector<8x1xf32>
      %41 = arith.mulf %39, %40 : vector<8x1xf32>
      %c0_36 = arith.constant 0 : index
      %c0_37 = arith.constant 0 : index
      %42 = vector.load %arg7[%c0_36, %c0_37] : memref<8x1xf32, #tpu.memory_space<vmem>>, vector<8x1xf32>
      %cst_38 = arith.constant 3.906250e-03 : f32
      %43 = vector.broadcast %cst_38 : f32 to vector<8x1xf32>
      %44 = arith.mulf %42, %43 : vector<8x1xf32>
      %45 = arith.mulf %38, %38 : vector<8x1xf32>
      %46 = arith.subf %44, %45 : vector<8x1xf32>
      %c0_39 = arith.constant 0 : index
      %c0_40 = arith.constant 0 : index
      %47 = vector.load %arg8[%c0_39, %c0_40] : memref<8x1xf32, #tpu.memory_space<vmem>>, vector<8x1xf32>
      %cst_41 = arith.constant 3.906250e-03 : f32
      %48 = vector.broadcast %cst_41 : f32 to vector<8x1xf32>
      %49 = arith.mulf %47, %48 : vector<8x1xf32>
      %50 = arith.mulf %41, %41 : vector<8x1xf32>
      %51 = arith.subf %49, %50 : vector<8x1xf32>
      %c0_42 = arith.constant 0 : index
      %c0_43 = arith.constant 0 : index
      %52 = vector.load %arg9[%c0_42, %c0_43] : memref<8x1xf32, #tpu.memory_space<vmem>>, vector<8x1xf32>
      %cst_44 = arith.constant 3.906250e-03 : f32
      %53 = vector.broadcast %cst_44 : f32 to vector<8x1xf32>
      %54 = arith.mulf %52, %53 : vector<8x1xf32>
      %55 = arith.mulf %38, %41 : vector<8x1xf32>
      %56 = arith.subf %54, %55 : vector<8x1xf32>
      %57 = arith.subf %38, %41 : vector<8x1xf32>
      %58 = arith.addf %46, %51 : vector<8x1xf32>
      %59 = arith.mulf %57, %57 : vector<8x1xf32>
      %60 = arith.addf %58, %59 : vector<8x1xf32>
      %61 = tpu.reciprocal %60 {approx = true} : vector<8x1xf32> -> vector<8x1xf32>
      %62 = arith.mulf %60, %61 : vector<8x1xf32>
      %cst_45 = arith.constant 2.000000e+00 : f32
      %63 = vector.broadcast %cst_45 : f32 to vector<8x1xf32>
      %64 = arith.subf %63, %62 : vector<8x1xf32>
      %65 = arith.mulf %61, %64 : vector<8x1xf32>
      %cst_46 = arith.constant 2.000000e+00 : f32
      %66 = vector.broadcast %cst_46 : f32 to vector<8x1xf32>
      %67 = arith.mulf %66, %56 : vector<8x1xf32>
      %68 = arith.mulf %67, %65 : vector<8x1xf32>
      %c0_47 = arith.constant 0 : index
      %c0_48 = arith.constant 0 : index
      %69 = vector.load %arg4[%c0_47, %c0_48] : memref<8x1xf32, #tpu.memory_space<vmem>>, vector<8x1xf32>
      tpu.vector_store %arg4[%c0_47, %c0_48], %68 {strides = array<i32>} : memref<8x1xf32, #tpu.memory_space<vmem>>, vector<8x1xf32>,
    } else {
    }
    return
  }
  func.func @transform_0(%arg0: i32, %arg1: i32) -> (i32, i32) {
    %c0_i32 = arith.constant 0 : i32
    return %arg0, %arg1 : i32, i32
  }
  func.func @transform_1(%arg0: i32, %arg1: i32) -> (i32, i32) {
    %c0_i32 = arith.constant 0 : i32
    return %arg0, %arg1 : i32, i32
  }
  func.func @transform_2(%arg0: i32, %arg1: i32) -> (i32, i32) {
    %c0_i32 = arith.constant 0 : i32
    %c0_i32_0 = arith.constant 0 : i32
    return %arg0, %c0_i32 : i32, i32
  }
}

</mosaic_0001>

<bundles_post_ra>
// kernel: tpu_custom_call.1
= control target key start
LH: loop header
LB: loop body
LE: loop exit
PB: predicated region body
PF: predicated region fallthrough
CT: control target
= control target key end

     0   :  { %7 = vsyncpa [#allocation8], 0  ;;  %s231_s0 = inlined_call_operand.hbm [shape: f32[8,256], index: 0, kind: input, shape index: {}]   ;;  %s232_s1 = inlined_call_operand.hbm [shape: f32[8,256], index: 1, kind: input, shape index: {}]   ;;  %s233_s2 = inlined_call_operand.vmem [shape: f32[8,1], index: 2, kind: output, shape index: {}]  }
   0x1   :  { %8 = vsyncpa [#allocation10], 0  ;;  %s175_s9 = smov [#allocation7]   ;;  %s176_s11 = smov [#allocation9]  }
   0x2   :  { %s15_s10 = sshll.u32 %s175_s9, 4  ;;  %s25_s12 = sshll.u32 %s176_s11, 4  ;;  %s16_s10 = int_to_ptr.vmem [resolvable:$true] %s15_s10  ;;  %s26_s12 = int_to_ptr.vmem [resolvable:$true] %s25_s12 }
   0x3   :  { %s127_s15 = scalar_lea.hbm %s231_s0, 256 }
   0x4   :  { %p128_p0 = scmp.ne.s32.totalorder %s231_s0, %s127_s15  ;;  %p131_p1 = scmp.lt.u32.totalorder %s127_s15, %s231_s0 }
   0x6   :  { %p133_p2 = pnand %p131_p1, %p128_p0 }
   0x8   :  { %136 = shalt.err (!%p133_p2)
}
   0x9   :  { %s137_s20 = scalar_lea.vmem %s16_s10, 256  ;;  %p142_p4 = scmp.lt.s32.totalorder %s16_s10, %s16_s10 }
   0xa   :  { %p138_p3 = scmp.ne.s32.totalorder %s16_s10, %s137_s20  ;;  %p143_p5 = scmp.lt.s32.totalorder %s137_s20, %s137_s20 }
   0xc   :  { %p144_p6 = por %p143_p5, %p142_p4 }
   0xe   :  { %p145_p7 = pnand %p144_p6, %p138_p3 }
  0x10   :  { %148 = shalt.err (!%p145_p7)
}
  0x11   :  { %18 = dma.hbm_to_vmem [thread:$0]  %s231_s0, 256, %s16_s10, [#allocation8]  }
  0x12   :  { %s149_s25 = scalar_lea.hbm %s232_s1, 256 }
  0x13   :  { %p150_p8 = scmp.ne.s32.totalorder %s232_s1, %s149_s25  ;;  %p153_p9 = scmp.lt.u32.totalorder %s149_s25, %s232_s1 }
  0x15   :  { %p155_p10 = pnand %p153_p9, %p150_p8 }
  0x17   :  { %158 = shalt.err (!%p155_p10)
}
  0x18   :  { %s159_s30 = scalar_lea.vmem %s26_s12, 256  ;;  %p164_p12 = scmp.lt.s32.totalorder %s26_s12, %s26_s12 }
  0x19   :  { %p160_p11 = scmp.ne.s32.totalorder %s26_s12, %s159_s30  ;;  %p165_p13 = scmp.lt.s32.totalorder %s159_s30, %s159_s30 }
  0x1b   :  { %p166_p0 = por %p165_p13, %p164_p12 }
  0x1d   :  { %p167_p1 = pnand %p166_p0, %p160_p11 }
  0x1f   :  { %170 = shalt.err (!%p167_p1)
}
  0x20   :  { %28 = dma.hbm_to_vmem [thread:$0]  %s232_s1, 256, %s26_s12, [#allocation10]  }
  0x21   :  { %171 = dma.done.wait [#allocation8], 256  }
  0x22   :  { %172 = vsyncadd [#allocation8], 4294967040 }
  0x23   :  { %173 = dma.done.wait [#allocation10], 256  }
  0x24   :  { %174 = vsyncadd [#allocation10], 4294967040  ;;  %vm39_vm0 = vcmask 7168   ;;  %v177_v0 = vmov 0.0   ;;  %v47_v1 = vld [vmem:[#allocation9] sm:$0xff]  ;;  %v48_v2 = vld [vmem:[#allocation9 + $0x8] sm:$0xff] }
  0x25   :  { %40 = vst.msk [vmem:[#allocation2] sm:$0xff] %vm39_vm0, %v177_v0  ;;  %41 = vst.msk [vmem:[#allocation3] sm:$0xff] %vm39_vm0, %v177_v0  ;;  %v45_v3 = vld [vmem:[#allocation7] sm:$0xff]  ;;  %v50_v4 = vadd.f32 %v48_v2, %v47_v1  ;;  %v63_v5 = vmul.f32 %v47_v1, %v47_v1  ;;  %v64_v6 = vmul.f32 %v48_v2, %v48_v2  ;;  %v46_v7 = vld [vmem:[#allocation7 + $0x8] sm:$0xff] }
  0x26   :  { %42 = vst.msk [vmem:[#allocation4] sm:$0xff] %vm39_vm0, %v177_v0  ;;  %43 = vst.msk [vmem:[#allocation5] sm:$0xff] %vm39_vm0, %v177_v0  ;;  %v71_v8 = vmul.f32 %v45_v3, %v45_v3  ;;  %v72_v9 = vmul.f32 %v46_v7, %v46_v7  ;;  %v57_v11 = vadd.f32 %v46_v7, %v45_v3 }
  0x27   :  { %44 = vst.msk [vmem:[#allocation6] sm:$0xff] %vm39_vm0, %v177_v0  ;;  %51 = vadd.xlane.f32.xlu0 %v50_v4  ;;  %v65_v10 = vadd.f32 %v64_v6, %v63_v5  ;;  %v79_v12 = vmul.f32 %v47_v1, %v45_v3  ;;  %v80_v13 = vmul.f32 %v48_v2, %v46_v7 }
  0x28   :  { %v73_v14 = vadd.f32 %v72_v9, %v71_v8 }
  0x29   :  { %66 = vadd.xlane.f32.xlu1 %v65_v10  ;;  %v81_v15 = vadd.f32 %v80_v13, %v79_v12 }
  0x2b   :  { %58 = vadd.xlane.f32.xlu0 %v57_v11 }
  0x2c   :  { %v49_v16 = vld [vmem:[#allocation2] sm:$0xff]  ;;  %v56_v21 = vld [vmem:[#allocation3] sm:$0xff] }
  0x2d   :  { %74 = vadd.xlane.f32.xlu1 %v73_v14  ;;  %v62_v18 = vld [vmem:[#allocation4] sm:$0xff]  ;;  %v70_v24 = vld [vmem:[#allocation5] sm:$0xff] }
  0x2e   :  { %v78_v27 = vld [vmem:[#allocation6] sm:$0xff] }
  0x2f   :  { %82 = vadd.xlane.f32.xlu0 %v81_v15 }
  0xb4   :  { %v52_v17 = vpop.xlane.xlu0 %51 }
  0xb5   :  { %v53_v19 = vadd.f32 %v52_v17, %v49_v16 }
  0xb6   :  { %v67_v20 = vpop.xlane.xlu1 %66 }
  0xb7   :  { %55 = vst.msk [vmem:[#allocation2] sm:$0xff] %vm39_vm0, %v53_v19  ;;  %v68_v22 = vadd.f32 %v67_v20, %v62_v18 }
  0xb8   :  { %v59_v23 = vpop.xlane.xlu0 %58 }
  0xb9   :  { %69 = vst.msk [vmem:[#allocation4] sm:$0xff] %vm39_vm0, %v68_v22  ;;  %v60_v25 = vadd.f32 %v59_v23, %v56_v21 }
  0xba   :  { %v75_v26 = vpop.xlane.xlu1 %74 }
  0xbb   :  { %61 = vst.msk [vmem:[#allocation3] sm:$0xff] %vm39_vm0, %v60_v25  ;;  %v76_v28 = vadd.f32 %v75_v26, %v70_v24 }
  0xbc   :  { %v83_v29 = vpop.xlane.xlu0 %82 }
  0xbd   :  { %77 = vst.msk [vmem:[#allocation5] sm:$0xff] %vm39_vm0, %v76_v28  ;;  %v84_v30 = vadd.f32 %v83_v29, %v78_v27 }
  0xbe   :  { %v89_v31 = vld [vmem:[#allocation2] sm:$0xff] }
  0xbf   :  { %v90_v32 = vmul.f32 0.00390625, %v89_v31  ;;  %85 = vst.msk [vmem:[#allocation6] sm:$0xff] %vm39_vm0, %v84_v30 }
  0xc0   :  { %v93_v33 = vld [vmem:[#allocation4] sm:$0xff] }
  0xc1   :  { %v94_v35 = vmul.f32 0.00390625, %v93_v33  ;;  %v95_v36 = vmul.f32 %v90_v32, %v90_v32 }
  0xc2   :  { %v91_v34 = vld [vmem:[#allocation3] sm:$0xff] }
  0xc3   :  { %v92_v37 = vmul.f32 0.00390625, %v91_v34  ;;  %v96_v42 = vsub.f32 %v94_v35, %v95_v36 }
  0xc4   :  { %v97_v38 = vld [vmem:[#allocation5] sm:$0xff] }
  0xc5   :  { %v105_v39 = vsub.f32 %v90_v32, %v92_v37  ;;  %v98_v40 = vmul.f32 0.00390625, %v97_v38  ;;  %v99_v41 = vmul.f32 %v92_v37, %v92_v37  ;;  %v103_v49 = vmul.f32 %v92_v37, %v90_v32 }
  0xc6   :  { %v101_v47 = vld [vmem:[#allocation6] sm:$0xff] }
  0xc7   :  { %v100_v43 = vsub.f32 %v98_v40, %v99_v41  ;;  %v107_v44 = vmul.f32 %v105_v39, %v105_v39  ;;  %v102_v48 = vmul.f32 0.00390625, %v101_v47 }
  0xc9   :  { %v106_v45 = vadd.f32 %v100_v43, %v96_v42  ;;  %v104_v52 = vsub.f32 %v102_v48, %v103_v49 }
  0xcb   :  { %v108_v46 = vadd.f32 %v107_v44, %v106_v45  ;;  %v113_v55 = vmul.f32 2.0, %v104_v52 }
  0xcd   :  { %125 = vrcp.f32 %v108_v46 }
  0xd7   :  { %v126_v50 = vpop.eup %125 }
  0xd8   :  { %v110_v51 = vmul.f32 %v126_v50, %v108_v46 }
  0xda   :  { %v111_v53 = vsub.f32 2.0, %v110_v51 }
  0xdc   :  { %v112_v54 = vmul.f32 %v126_v50, %v111_v53 }
  0xde   :  { %v114_v56 = vmul.f32 %v113_v55, %v112_v54 }
  0xe0   :  { %115 = vst.msk [vmem:[%s233_s2] sm:$0xff] %vm39_vm0, %v114_v56 }
  0xe1   :  { %120 = vsyncpa [#allocation8], 1 }
  0xe2   :  { %121 = vsyncpa [#allocation10], 1 }

</bundles_post_ra>
